<compile_context>
chip_gen: v7x
topology: tpu7x:2x2x1
jax: 0.10.0
libtpu: 0.0.40
codegen_flags: <defaults>
</compile_context>

<pallas_src>
import functools

import jax
import jax.numpy as jnp
from jax.experimental import pallas as pl
from jax.experimental.pallas import tpu as pltpu


def _choose_tile(n, cap):
    """Largest multiple of 8 that divides n and is <= cap (else n itself)."""
    if n <= cap:
        return n
    t = (cap // 8) * 8
    while t >= 8:
        if n % t == 0:
            return t
        t -= 8
    # TODO(synk): pad + mask awkward N instead of falling back to one full tile.
    return n


def _vmem_limit_bytes():
    """Generation-aware VMEM request with headroom for Mosaic scratch and
    double buffers (v7x only has 64 MiB per TensorCore)."""
    try:
        cap = pltpu.get_tpu_info().vmem_capacity_bytes
    except Exception:  # pragma: no cover - conservative fallback
        cap = 64 * 1024 * 1024
    return int(min(cap * 3 // 4, 96 * 1024 * 1024))


# ---------------------------------------------------------------------------
# Kernel 1: fused QKV projection  y = x @ W_qkv + b_qkv  (bf16 MXU operands).
# ---------------------------------------------------------------------------
def _qkv_proj_kernel(x_ref, w_ref, b_ref, o_ref):
    x = x_ref[0]                                               # (TM, C) bf16
    y = jnp.dot(x, w_ref[...], preferred_element_type=jnp.float32)
    o_ref[0] = (y + b_ref[...]).astype(o_ref.dtype)            # (TM, 3C)


def _qkv_projection(x_bf16, wqkv_bf16, bqkv_f32):
    B, N, C = x_bf16.shape
    TM = _choose_tile(N, 512)
    # Note: W_qkv has a constant index_map so it is DMA'd once and stays
    # resident; its second pipeline buffer is wasted VMEM but harmless at
    # these sizes.
    return pl.pallas_call(
        _qkv_proj_kernel,
        out_shape=jax.ShapeDtypeStruct((B, N, 3 * C), jnp.bfloat16),
        grid_spec=pltpu.PrefetchScalarGridSpec(
            num_scalar_prefetch=0,
            grid=(B, N // TM),
            in_specs=[
                pl.BlockSpec((1, TM, C), lambda b, i: (b, i, 0)),      # x
                pl.BlockSpec((C, 3 * C), lambda b, i: (0, 0)),         # W_qkv
                pl.BlockSpec((1, 3 * C), lambda b, i: (0, 0)),         # b_qkv
            ],
            out_specs=pl.BlockSpec((1, TM, 3 * C), lambda b, i: (b, i, 0)),
        ),
        compiler_params=pltpu.CompilerParams(
            dimension_semantics=("parallel", "parallel"),
            vmem_limit_bytes=_vmem_limit_bytes()),
    )(x_bf16, wqkv_bf16, bqkv_f32)


# ---------------------------------------------------------------------------
# Kernel 2: flash attention (online softmax, all heads per step) + fused
# output projection.  Grid: (B, N//TQ, N//TK); kv is the reduction axis.
# ---------------------------------------------------------------------------
def _flash_attn_proj_kernel(q_ref, k_ref, v_ref, wproj_ref, bproj_ref, o_ref,
                            m_sc, l_sc, ctx_sc, *, num_heads, head_dim):
    kv = pl.program_id(2)
    nkv = pl.num_programs(2)

    @pl.when(kv == 0)
    def _():
        m_sc[...] = jnp.full_like(m_sc, -jnp.inf)
        l_sc[...] = jnp.zeros_like(l_sc)
        ctx_sc[...] = jnp.zeros_like(ctx_sc)

    q = q_ref[0]                      # (TQ, C) bf16, scale folded into W_qkv
    k = k_ref[0]                      # (TK, C) bf16
    v = v_ref[0]                      # (TK, C) bf16

    # Online softmax; all heads of this (q-tile, kv-tile) in one grid step.
    # The (H, N, N) score tensor is never materialized.
    for h in range(num_heads):
        cs = slice(h * head_dim, (h + 1) * head_dim)
        s = jax.lax.dot_general(q[:, cs], k[:, cs], (((1,), (1,)), ((), ())),
                                preferred_element_type=jnp.float32)  # (TQ,TK)
        m_prev = m_sc[:, h:h + 1]
        m_new = jnp.maximum(m_prev, jnp.max(s, axis=-1, keepdims=True))
        alpha = jnp.exp(m_prev - m_new)
        p = jnp.exp(s - m_new)
        l_sc[:, h:h + 1] = alpha * l_sc[:, h:h + 1] + jnp.sum(
            p, axis=-1, keepdims=True)
        ctx_sc[:, cs] = alpha * ctx_sc[:, cs] + jnp.dot(
            p.astype(v.dtype), v[:, cs], preferred_element_type=jnp.float32)
        m_sc[:, h:h + 1] = m_new

    # Last kv tile: normalize each head (exact reciprocal on a (TQ, 1) vector
    # is essentially free) and run ONE deep (TQ, C) @ (C, C) projection
    # against the VMEM-resident W_proj.
    # Note: if masking is ever added, guard l == 0 before dividing.
    @pl.when(kv == nkv - 1)
    def _():
        parts = []
        for h in range(num_heads):
            cs = slice(h * head_dim, (h + 1) * head_dim)
            inv_l = 1.0 / l_sc[:, h:h + 1]
            parts.append((ctx_sc[:, cs] * inv_l).astype(wproj_ref.dtype))
        ctx = jnp.concatenate(parts, axis=-1)                   # (TQ, C) bf16
        out = jnp.dot(ctx, wproj_ref[...], preferred_element_type=jnp.float32)
        o_ref[0] = (out + bproj_ref[...]).astype(o_ref.dtype)


def _flash_attention_proj(qkv_bf16, wproj_bf16, bproj_f32, *, num_heads,
                          out_dtype):
    B, N, C3 = qkv_bf16.shape
    C = C3 // 3
    hd = C // num_heads

    TQ = _choose_tile(N, 512)
    if B * (N // TQ) < 2:       # keep both v7x TensorCores busy when B == 1
        TQ = _choose_tile(N, max(8, TQ // 2))
    TK = _choose_tile(N, 512)

    kernel = functools.partial(_flash_attn_proj_kernel,
                               num_heads=num_heads, head_dim=hd)

    return pl.pallas_call(
        kernel,
        out_shape=jax.ShapeDtypeStruct((B, N, C), out_dtype),
        grid_spec=pltpu.PrefetchScalarGridSpec(
            num_scalar_prefetch=0,
            grid=(B, N // TQ, N // TK),
            in_specs=[
                # q / k / v are C-wide column blocks of the qkv tensor:
                # block index 0 / 1 / 2 along the last (3C) axis.
                pl.BlockSpec((1, TQ, C), lambda b, qi, kv: (b, qi, 0)),
                pl.BlockSpec((1, TK, C), lambda b, qi, kv: (b, kv, 1)),
                pl.BlockSpec((1, TK, C), lambda b, qi, kv: (b, kv, 2)),
                # W_proj / b_proj fully resident (constant index_map).
                pl.BlockSpec((C, C), lambda b, qi, kv: (0, 0)),
                pl.BlockSpec((1, C), lambda b, qi, kv: (0, 0)),
            ],
            out_specs=pl.BlockSpec((1, TQ, C), lambda b, qi, kv: (b, qi, 0)),
            scratch_shapes=[
                pltpu.VMEM((TQ, num_heads), jnp.float32),   # running max
                pltpu.VMEM((TQ, num_heads), jnp.float32),   # running sum
                pltpu.VMEM((TQ, C), jnp.float32),           # context acc
            ],
        ),
        compiler_params=pltpu.CompilerParams(
            dimension_semantics=("parallel", "parallel", "arbitrary"),
            vmem_limit_bytes=_vmem_limit_bytes()),
    )(qkv_bf16, qkv_bf16, qkv_bf16, wproj_bf16, bproj_f32)


def multi_head_attention(x, wqkv, bqkv, wproj, bproj, *, num_heads):
    """x: (B, N, C). Weights stored as (in, out); biases as (1, out)."""
    B, N, C = x.shape
    head_dim = C // num_heads

    # Fold 1/sqrt(head_dim) into the q columns of the qkv Linear.
    # TODO(synk): hoist this folding to weight-prep time so it is not redone
    # on every forward call.
    scale = float(head_dim) ** -0.5
    wqkv_s = wqkv.at[:, :C].multiply(scale)
    bqkv_s = bqkv.at[:, :C].multiply(scale)

    # bf16 MXU operands; biases / softmax stats / accumulators stay fp32.
    qkv = _qkv_projection(x.astype(jnp.bfloat16),
                          wqkv_s.astype(jnp.bfloat16),
                          bqkv_s.astype(jnp.float32))           # (B, N, 3C)

    # No head-split reshape/transpose: kernel 2 slices q/k/v column blocks
    # of `qkv` directly via its BlockSpecs.
    return _flash_attention_proj(qkv,
                                 wproj.astype(jnp.bfloat16),
                                 bproj.astype(jnp.float32),
                                 num_heads=num_heads,
                                 out_dtype=x.dtype)


def reference(x, wqkv, bqkv, wproj, bproj, *, num_heads):
    # Pure-JAX fp32 reference mirroring the PyTorch forward.
    B, N, C = x.shape
    hd = C // num_heads
    scale = float(hd) ** -0.5
    qkv = x @ wqkv + bqkv[0]
    qkv = qkv.reshape(B, N, 3, num_heads, hd).transpose(2, 0, 3, 1, 4)
    q, k, v = qkv[0], qkv[1], qkv[2]                        # (B, H, N, hd)
    attn = (q @ k.transpose(0, 1, 3, 2)) * scale
    attn = jax.nn.softmax(attn, axis=-1)
    out = (attn @ v).transpose(0, 2, 1, 3).reshape(B, N, C)
    return out @ wproj + bproj[0]


if __name__ == "__main__":
    # Small shape consistent with the module: lane-aligned C (multiple of 128)
    # keeps every BlockSpec last dim (C / 3C) hardware-aligned.
    B, N, C = 2, 128, 128
    num_heads = 8            # head_dim = 16

    key = jax.random.PRNGKey(0)
    kx, k1, k2, k3, k4 = jax.random.split(key, 5)

    x = jax.random.normal(kx, (B, N, C), dtype=jnp.float32)
    # nn.Linear(dim, dim*3) / nn.Linear(dim, dim) params, stored as (in, out).
    wqkv = jax.random.normal(k1, (C, 3 * C), dtype=jnp.float32) * (C ** -0.5)
    bqkv = jax.random.normal(k2, (1, 3 * C), dtype=jnp.float32) * 0.02
    wproj = jax.random.normal(k3, (C, C), dtype=jnp.float32) * (C ** -0.5)
    bproj = jax.random.normal(k4, (1, C), dtype=jnp.float32) * 0.02

    y = multi_head_attention(x, wqkv, bqkv, wproj, bproj, num_heads=num_heads)
    y = jax.block_until_ready(y)

    y_ref = reference(x, wqkv, bqkv, wproj, bproj, num_heads=num_heads)
    # bf16 MXU operands + bf16 qkv intermediate -> looser tolerance vs fp32.
    err = float(jnp.max(jnp.abs(y - y_ref)))
    assert err < 1e-1, f"mismatch vs reference: max abs err {err}"

    print("KERNEL_OK")
</pallas_src>

<mosaic_0001>
module attributes {stable_mosaic.version = 11 : i64} {
  func.func @_qkv_proj_kernel(%arg0: i32, %arg1: i32, %arg2: memref<1x128x128xbf16, #tpu.memory_space<vmem>>, %arg3: memref<128x384xbf16, #tpu.memory_space<vmem>>, %arg4: memref<1x384xf32, #tpu.memory_space<vmem>>, %arg5: memref<1x128x384xbf16, #tpu.memory_space<vmem>>) attributes {dimension_semantics = [#tpu.dimension_semantics<parallel>, #tpu.dimension_semantics<parallel>], iteration_bounds = array<i64: 2, 1>, scalar_prefetch = 0 : i64, scratch_operands = 0 : i64, tpu.core_type = #tpu.core_type<tc>, window_params = [{transform_indices = @transform_0, window_bounds = array<i64: 1, 128, 128>}, {pipeline_mode = #tpu.pipeline_mode<synchronous>, transform_indices = @transform_1, window_bounds = array<i64: 128, 384>}, {pipeline_mode = #tpu.pipeline_mode<synchronous>, transform_indices = @transform_2, window_bounds = array<i64: 1, 384>}, {transform_indices = @transform_3, window_bounds = array<i64: 1, 128, 384>}]} {
    %c0 = arith.constant 0 : index
    %c0_0 = arith.constant 0 : index
    %c0_1 = arith.constant 0 : index
    %0 = vector.load %arg2[%c0, %c0_0, %c0_1] : memref<1x128x128xbf16, #tpu.memory_space<vmem>>, vector<1x128x128xbf16>
    %1 = vector.shape_cast %0 : vector<1x128x128xbf16> to vector<128x128xbf16>
    %c0_2 = arith.constant 0 : index
    %c0_3 = arith.constant 0 : index
    %2 = vector.load %arg3[%c0_2, %c0_3] : memref<128x384xbf16, #tpu.memory_space<vmem>>, vector<128x384xbf16>
    %cst = arith.constant dense<0.000000e+00> : vector<128x384xf32>
    %3 = tpu.matmul %1, %2, %cst {dimension_numbers = #tpu.dot_dimension_numbers<[1], [0], [0], [1], [0, 0, 1, 1], [], []>} : vector<128x128xbf16>, vector<128x384xbf16>, vector<128x384xf32> -> vector<128x384xf32>
    %c0_4 = arith.constant 0 : index
    %c0_5 = arith.constant 0 : index
    %4 = vector.load %arg4[%c0_4, %c0_5] : memref<1x384xf32, #tpu.memory_space<vmem>>, vector<1x384xf32>
    %5 = vector.broadcast %4 : vector<1x384xf32> to vector<128x384xf32>
    %6 = arith.addf %3, %5 : vector<128x384xf32>
    %7 = arith.truncf %6 : vector<128x384xf32> to vector<128x384xbf16>
    %c0_6 = arith.constant 0 : index
    %c0_7 = arith.constant 0 : index
    %c0_8 = arith.constant 0 : index
    %8 = vector.load %arg5[%c0_6, %c0_7, %c0_8] : memref<1x128x384xbf16, #tpu.memory_space<vmem>>, vector<1x128x384xbf16>
    %9 = vector.shape_cast %8 : vector<1x128x384xbf16> to vector<128x384xbf16>
    %10 = vector.shape_cast %7 : vector<128x384xbf16> to vector<1x128x384xbf16>
    tpu.vector_store %arg5[%c0_6, %c0_7, %c0_8], %10 {strides = array<i32>} : memref<1x128x384xbf16, #tpu.memory_space<vmem>>, vector<1x128x384xbf16>,
    return
  }
  func.func @transform_0(%arg0: i32, %arg1: i32) -> (i32, i32, i32) {
    %c0_i32 = arith.constant 0 : i32
    %c0_i32_0 = arith.constant 0 : i32
    return %arg0, %arg1, %c0_i32 : i32, i32, i32
  }
  func.func @transform_1(%arg0: i32, %arg1: i32) -> (i32, i32) {
    %c0_i32 = arith.constant 0 : i32
    %c0_i32_0 = arith.constant 0 : i32
    %c0_i32_1 = arith.constant 0 : i32
    return %c0_i32, %c0_i32_0 : i32, i32
  }
  func.func @transform_2(%arg0: i32, %arg1: i32) -> (i32, i32) {
    %c0_i32 = arith.constant 0 : i32
    %c0_i32_0 = arith.constant 0 : i32
    %c0_i32_1 = arith.constant 0 : i32
    return %c0_i32, %c0_i32_0 : i32, i32
  }
  func.func @transform_3(%arg0: i32, %arg1: i32) -> (i32, i32, i32) {
    %c0_i32 = arith.constant 0 : i32
    %c0_i32_0 = arith.constant 0 : i32
    return %arg0, %arg1, %c0_i32 : i32, i32, i32
  }
}

</mosaic_0001>

<bundles_post_ra>
// kernel: tpu_custom_call.1
= control target key start
LH: loop header
LB: loop body
LE: loop exit
PB: predicated region body
PF: predicated region fallthrough
CT: control target
= control target key end

     0   :  { %8 = vsyncpa [#allocation3], 0  ;;  %s1769_s0 = inlined_call_operand.hbm [shape: bf16[2,128,128], index: 0, kind: input, shape index: {}]   ;;  %s1770_s1 = inlined_call_operand.hbm [shape: bf16[128,384], index: 1, kind: input, shape index: {}]   ;;  %s1771_s2 = inlined_call_operand.vmem [shape: f32[1,384], index: 2, kind: input, shape index: {}]   ;;  %s1772_s3 = inlined_call_operand.hbm [shape: bf16[2,128,384], index: 3, kind: output, shape index: {}]  }
   0x1   :  { %10 = vsyncpa [#allocation3 + $0x1], 0 }
   0x2   :  { %11 = vsyncpa [#allocation6], 0 }
   0x3   :  { %12 = vsyncpa [#allocation4], 0 }
   0x4   :  { %14 = vsyncpa [#allocation4 + $0x1], 0  ;;  %s1439_s12 = smov 0   ;;  %s1441_s13 = smov 0  }
   0x5   :  { %s1443_s14 = smov 0   ;;  %s1445_s15 = smov 0  }
   0x6   :  { %s1447_s16 = smov 0   ;;  %s1449_s17 = smov 0  }
   0x7 LB: > { %s982_s18 = sadd.s32 4294967295, %s1407_s17   ;;  %s983_s19 = sadd.s32 4294967294, %s1407_s17   ;;  %s1407_s17 = sphi %s1449_s17, %s20_s17   ;;  %s1403_s16 = sphi %s1447_s16, %s1796_s16   ;;  %s1399_s15 = sphi %s1445_s15, %s1795_s15   ;;  %s1395_s14 = sphi %s1443_s14, %s1794_s14   ;;  %s1391_s13 = sphi %s1441_s13, %s1793_s13   ;;  %s1387_s12 = sphi %s1439_s12, %s1792_s12  }
   0x8   : > { %p54_p0 = scmp.ne.s32.totalorder %s1391_s13, %s1387_s12  ;;  %p1473_p1 = scmp.eq.s32.totalorder %s982_s18, 0 }
   0x9   : > { %p1477_p2 = scmp.eq.s32.totalorder %s982_s18, 1  ;;  %p128_p3 = scmp.eq.s32.totalorder %s983_s19, 1 }
   0xa   : > { %s1777_s20 = scalar_select %p1473_p1, 1, 0 }
   0xb   : > { %s1778_s21 = scalar_select %p1477_p2, 1, 0 }
   0xc   : > { %p1483_p4 = por %p1473_p1, %p54_p0  ;;  %p984_p5 = scmp.ge.s32.totalorder %s1407_s17, 1 }
   0xd   : > { %p1488_p6 = por %p128_p3, %p54_p0  ;;  %p135_p7 = scmp.lt.s32.totalorder %s1407_s17, 3 }
   0xe   : > { %s1779_s22 = scalar_select %p1483_p4, 1, 0 }
   0xf   : > { %s1780_s23 = scalar_select %p1488_p6, 1, 0 }
  0x10   : > { %p1493_p8 = pnand %p984_p5, %p135_p7  ;;  %s1409_s25 = smov [#allocation5]  }
  0x11   : > { %s147_s26 = sshll.u32 %s1409_s25, 4  ;;  %s32_s28 = sadd.s32 1, %s1403_s16  ;;  %s148_s26 = int_to_ptr.vmem [resolvable:$true] %s147_s26 }
  0x12   : > { %s1781_s24 = scalar_select %p1493_p8, 1, 0 }
  0x13   : > { %p1151_p9 = pneg %p1493_p8  ;;  %s1263_s4 = scalar_lea.hbm %s1770_s1, 3072 }
  0x14   : > { %p1264_p12 = scmp.ne.s32.totalorder %s1770_s1, %s1263_s4  ;;  %p1270_p5 = scmp.lt.u32.totalorder %s1263_s4, %s1770_s1 }
  0x15   : > { %p1502_p11 = pnand %p1151_p9, %p1473_p1 }
  0x17   : > { %p1265_p13 = pneg %p1502_p11 }
  0x19   : > { %p1266_p0 = pnand %p1265_p13, %p1264_p12 }
  0x1b   : > { %p1267_p3 = pneg %p1266_p0 }
  0x1d   : > { %p1272_p7 = pnand %p1270_p5, %p1267_p3 }
  0x1f   : > { %1275 = shalt.err (!%p1272_p7)
}
  0x20   : > { %s1276_s9 = scalar_lea.vmem %s148_s26, 3072  ;;  %p1284_p1 = scmp.lt.s32.totalorder %s148_s26, %s148_s26 }
  0x21   : > { %p1277_p9 = scmp.ne.s32.totalorder %s148_s26, %s1276_s9  ;;  %p1285_p4 = scmp.lt.s32.totalorder %s1276_s9, %s1276_s9 }
  0x23   : > { %p1279_p10 = pnand %p1277_p9, %p1265_p13  ;;  %p1286_p8 = por %p1285_p4, %p1284_p1 }
  0x25   : > { %p1280_p6 = pneg %p1279_p10 }
  0x27   : > { %p1287_p2 = pnand %p1286_p8, %p1280_p6 }
  0x29   : > { %1290 = shalt.err (!%p1287_p2)
}
  0x2a   : > { %s1410_s10 = smov 192   ;;  %s1411_s11 = smov 12  }
  0x2b   : > { %1154 = dma.hbm_to_vmem [thread:$0]  (!%p1502_p11), %s1770_s1, 3072, %s148_s26, [#allocation6], %s1410_s10, %s1410_s10, %s1411_s11  }
  0x2c   : > { %p34_p1 = scmp.ge.s32.totalorder %s32_s28, 2  ;;  %s41_s25 = sadd.s32 1, %s1395_s14 }
  0x2d   : > { %p48_p2 = scmp.ne.s32.totalorder %s1395_s14, %s1391_s13  ;;  %p49_p4 = scmp.eq.s32.totalorder %s1407_s17, 0 }
  0x2e   : > { %s1798_s28 = smov (%p34_p1, %s32_s28), 0  ;;  %p1784_p8 = scmp.ne.s32.totalorder %s1778_s21, 0 }
  0x2f   : > { %p1529_p6 = por %p49_p4, %p48_p2  ;;  %s36_s27 = ssub.s32 %s1403_s16, %s1798_s28 }
  0x30   : > { %p1535_p10 = por %p1784_p8, %p48_p2  ;;  %p1164_p12 = scmp.lt.s32.totalorder %s1407_s17, 2 }
  0x31   : > { %p39_p11 = scmp.eq.s32.totalorder %s36_s27, 0  ;;  %s164_s26 = sand.u32 1, %s1395_s14  }
  0x32   : > { %s987_s4 = sshll.u32 %s164_s26, 6  ;;  %s1060_s6 = sshll.u32 %s1403_s16, 10 }
  0x33   : > { %s1544_s5 = scalar_select %p39_p11, %s1395_s14, %s41_s25  }
  0x34   : > { %s1550_s9 = scalar_lea.hbm %s1769_s0, %s1060_s6  ;;  %s168_s21 = scalar_lea.vmem [#allocation2], %s987_s4 }
  0x35   : > { %s177_s10 = sshll.u32 %s168_s21, 4  ;;  %p1556_p13 = pnand %p1164_p12, %p1529_p6  ;;  %s1552_s10 = int_to_ptr.vmem [resolvable:$true] %s177_s10 }
  0x36   : > { %s1560_s18 = scalar_lea.sflag [#allocation3], %s164_s26  ;;  %s1291_s19 = scalar_lea.hbm %s1550_s9, 1024 }
  0x37   : > { %p1292_p0 = scmp.ne.s32.totalorder %s1550_s9, %s1291_s19  ;;  %p1293_p3 = pneg %p1556_p13 }
  0x38   : > { %s1296_s29 = scalar_lea.hbm %s1769_s0, 2048  ;;  %p1297_p9 = scmp.lt.u32.totalorder %s1550_s9, %s1769_s0 }
  0x39   : > { %p1294_p5 = pnand %p1293_p3, %p1292_p0  ;;  %p1298_p1 = scmp.lt.u32.totalorder %s1296_s29, %s1291_s19 }
  0x3a   : > { %p1300_p4 = scmp.lt.u32.totalorder %s1291_s19, %s1550_s9 }
  0x3b   : > { %p1295_p7 = pneg %p1294_p5  ;;  %p1299_p2 = por %p1298_p1, %p1297_p9 }
  0x3d   : > { %p1301_p6 = por %p1300_p4, %p1299_p2 }
  0x3f   : > { %p1302_p8 = pnand %p1301_p6, %p1295_p7 }
  0x41   : > { %1305 = shalt.err (!%p1302_p8)
}
  0x42   : > { %s1306_s26 = scalar_lea.vmem %s1552_s10, 1024  ;;  %s1412_s7 = smov [#allocation2]  }
  0x43   : > { %p1307_p12 = scmp.ne.s32.totalorder %s1552_s10, %s1306_s26  ;;  %s1311_s8 = sshll.u32 %s1412_s7, 4  ;;  %s1312_s8 = int_to_ptr.vmem [resolvable:$false] %s1311_s8 }
  0x44   : > { %s1313_s21 = scalar_lea.vmem %s1312_s8, 2048  ;;  %p1314_p5 = scmp.lt.s32.totalorder %s1552_s10, %s1312_s8 }
  0x45   : > { %p1309_p11 = pnand %p1307_p12, %p1293_p3  ;;  %p1315_p9 = scmp.lt.s32.totalorder %s1313_s21, %s1306_s26 }
  0x47   : > { %p1310_p0 = pneg %p1309_p11  ;;  %p1316_p1 = por %p1315_p9, %p1314_p5 }
  0x49   : > { %p1317_p2 = pnand %p1316_p1, %p1310_p0 }
  0x4b   : > { %1320 = shalt.err (!%p1317_p2)
}
  0x4c   : > { %s1413_s19 = smov 64   ;;  %s1414_s25 = smov 4  }
  0x4d   : > { %1158 = dma.hbm_to_vmem [thread:$0]  (!%p1556_p13), %s1550_s9, 1024, %s1552_s10, %s1560_s18, %s1413_s19, %s1413_s19, %s1414_s25  }
  0x4e   : > { %p1787_p3 = scmp.ne.s32.totalorder %s1781_s24, 0 }
  0x4f   : > { %s1591_s27 = sand.u32 (!%p1787_p3), 1, %s1391_s13   ;;  %p1788_p7 = scmp.ne.s32.totalorder (!%p1787_p3), %s1779_s22, 0 }
  0x50   : > { %189 = sbr.rel (%p1787_p3) target bundleno = 414 (0x19e), region = 32  ;;  %s991_s29 = sshll.u32 (!%p1787_p3), %s1591_s27, 6 }
  0x51   : > { %s192_s4 = scalar_lea.sflag (!%p1787_p3), [#allocation3], %s1591_s27  ;;  %s1595_s6 = scalar_lea.vmem (!%p1787_p3), [#allocation2], %s991_s29 }
  0x57   : > { %1374 = dma.done.wait (%p1788_p7), %s192_s4, 1024  }
  0x58   : > { %1376 = vsyncadd (%p1788_p7), %s192_s4, 4294966272  ;;  %p1789_p13 = scmp.ne.s32.totalorder %s1777_s20, 0 }
  0x5a   : > { %1378 = dma.done.wait (%p1789_p13), [#allocation6], 3072  }
  0x5b   : > { %1380 = vsyncadd (%p1789_p13), [#allocation6], 4294964224  ;;  %v1415_v0 = vmov 0   ;;  %v1223_v1 = vld [vmem:[#allocation5 + $0x4] ss:$12 sps:$4 sm:$0xff]   ;;  %v1251_v26 = vld [vmem:[%s1595_s6 + $0x8] sm:$0xff]   ;;  %v275_v33 = vlaneseq }
  0x5c   : > { %498 = vmatprep.mubr.bf16.mxu0 %v1415_v0  ;;  %v1225_v2 = vld [vmem:[#allocation5] ss:$12 sps:$4 sm:$0xff]   ;;  %466 = vmatprep.subr.bf16.mxu0 %v1223_v1  ;;  %v1226_v3 = vld [vmem:[#allocation5 + $0x1c] ss:$12 sps:$4 sm:$0xff]   ;;  %v1228_v4 = vld [vmem:[#allocation5 + $0x18] ss:$12 sps:$4 sm:$0xff]  }
  0x5d   : > { %467 = vmatpush1.bf16.msra.mxu0 %v1225_v2  ;;  %v1229_v5 = vld [vmem:[#allocation5 + $0x34] ss:$12 sps:$4 sm:$0xff]   ;;  %v1231_v6 = vld [vmem:[#allocation5 + $0x30] ss:$12 sps:$4 sm:$0xff]   ;;  %v1232_v7 = vld [vmem:[#allocation5 + $0x4c] ss:$12 sps:$4 sm:$0xff]  }
  0x5e   : > { %468 = vmatprep.subr.bf16.mxu0 %v1226_v3  ;;  %v1234_v8 = vld [vmem:[#allocation5 + $0x48] ss:$12 sps:$4 sm:$0xff]   ;;  %v1235_v9 = vld [vmem:[#allocation5 + $0x64] ss:$12 sps:$4 sm:$0xff]   ;;  %v1249_v12 = vld [vmem:[#allocation5 + $0x20] ss:$12 sps:$4 sm:$0xff]  }
  0x5f   : > { %v1247_v10 = vld [vmem:[#allocation5 + $0x8] ss:$12 sps:$4 sm:$0xff]   ;;  %v1248_v11 = vld [vmem:[%s1595_s6] sm:$0xff]   ;;  %v1252_v17 = vld [vmem:[#allocation5 + $0x50] ss:$12 sps:$4 sm:$0xff]   ;;  %v276_v34 = vshrl.u32 %v275_v33, 7 }
  0x60   : > { %1109 = vmatprep.subr.bf16.mxu1 %v1247_v10  ;;  %v1237_v13 = vld [vmem:[#allocation5 + $0x60] ss:$12 sps:$4 sm:$0xff]   ;;  %1125 = vmatprep.mubr.bf16.mxu1 %v1248_v11  ;;  %v1250_v14 = vld [vmem:[#allocation5 + $0x38] ss:$12 sps:$4 sm:$0xff]   ;;  %v1238_v15 = vld [vmem:[#allocation5 + $0x7c] ss:$12 sps:$4 sm:$0xff]  }
  0x61   : > { %469 = vmatpush1.bf16.msra.mxu0 %v1228_v4  ;;  %1110 = vmatpush3.bf16.msra.mxu1 %v1247_v10  ;;  %v1240_v16 = vld [vmem:[#allocation5 + $0x78] ss:$12 sps:$4 sm:$0xff]   ;;  %v1241_v18 = vld [vmem:[#allocation5 + $0x94] ss:$12 sps:$4 sm:$0xff]   ;;  %v1243_v19 = vld [vmem:[#allocation5 + $0x90] ss:$12 sps:$4 sm:$0xff]  }
  0x62   : > { %470 = vmatprep.subr.bf16.mxu0 %v1229_v5  ;;  %1111 = vmatprep.subr.bf16.mxu1 %v1249_v12  ;;  %v1253_v20 = vld [vmem:[#allocation5 + $0x68] ss:$12 sps:$4 sm:$0xff]   ;;  %v1244_v21 = vld [vmem:[#allocation5 + $0xac] ss:$12 sps:$4 sm:$0xff]   ;;  %v1258_v25 = vld [vmem:[#allocation5 + $0xb0] ss:$12 sps:$4 sm:$0xff]  }
  0x63   : > { %v1246_v22 = vld [vmem:[#allocation5 + $0xa8] ss:$12 sps:$4 sm:$0xff]   ;;  %v1255_v23 = vld [vmem:[#allocation5 + $0x80] ss:$12 sps:$4 sm:$0xff]   ;;  %v1256_v24 = vld [vmem:[#allocation5 + $0x98] ss:$12 sps:$4 sm:$0xff]  }
  0x64   : > { %v1254_v27 = vld [vmem:[%s1595_s6 + $0x10] sm:$0xff]   ;;  %v1257_v28 = vld [vmem:[%s1595_s6 + $0x18] sm:$0xff]   ;;  %v1259_v29 = vld [vmem:[%s1595_s6 + $0x20] sm:$0xff]   ;;  %v277_v35 = vsub.s32 0, %v276_v34  ;;  %v281_v37 = vsub.s32 1, %v276_v34  ;;  %s1141_s24 = smul.u32 192, %s1591_s27 }
  0x65   : > { %471 = vmatpush1.bf16.msra.mxu0 %v1231_v6  ;;  %1112 = vmatpush3.bf16.msra.mxu1 %v1249_v12  ;;  %v1260_v30 = vld [vmem:[%s1595_s6 + $0x28] sm:$0xff]   ;;  %v1261_v31 = vld [vmem:[%s1595_s6 + $0x30] sm:$0xff]   ;;  %v1262_v32 = vld [vmem:[%s1595_s6 + $0x38] sm:$0xff]   ;;  %v285_v49 = vsub.s32 2, %v276_v34  ;;  %s1142_s10 = smul.u32 3072, %s1399_s15  ;;  %s869_s15 = scalar_lea.sflag [#allocation4], %s1591_s27 }
  0x66   : > { %472 = vmatprep.subr.bf16.mxu0 %v1232_v7  ;;  %1113 = vmatprep.subr.bf16.mxu1 %v1250_v14  ;;  %v273_v36 = vld [vmem:[%s1771_s2] sm:$0x7]  ;;  %s1633_s9 = scalar_lea.vmem [#allocation7], %s1141_s24  ;;  %s1416_s21 = smov [#allocation7]  }
  0x67   : > { %v1624_v38 = vrot.slane %v273_v36, %v277_v35  ;;  %v1626_v39 = vrot.slane %v273_v36, %v281_v37  ;;  %v1637_v52 = vrot.slane %v273_v36, %v285_v49  ;;  %s885_s11 = sshll.u32 %s1633_s9, 4  ;;  %s1716_s7 = scalar_lea.hbm %s1772_s3, %s1142_s10  ;;  %s1718_s11 = int_to_ptr.vmem [resolvable:$true] %s885_s11 }
  0x68   : > { %s1321_s8 = scalar_lea.vmem %s1718_s11, 3072  ;;  %s1325_s19 = sshll.u32 %s1416_s21, 4  ;;  %s1326_s19 = int_to_ptr.vmem [resolvable:$false] %s1325_s19 }
  0x69   : > { %473 = vmatpush1.bf16.msra.mxu0 %v1234_v8  ;;  %1114 = vmatpush3.bf16.msra.mxu1 %v1250_v14  ;;  %p1322_p4 = scmp.ne.s32.totalorder %s1718_s11, %s1321_s8  ;;  %s1327_s25 = scalar_lea.vmem %s1326_s19, 6144 }
  0x6a   : > { %474 = vmatprep.subr.bf16.mxu0 %v1235_v9  ;;  %1115 = vmatprep.subr.bf16.mxu1 %v1252_v17  ;;  %p1328_p12 = scmp.lt.s32.totalorder %s1718_s11, %s1326_s19  ;;  %p1329_p11 = scmp.lt.s32.totalorder %s1327_s25, %s1321_s8 }
  0x6b   : > { %p1323_p6 = pnand %p1322_p4, %p1535_p10 }
  0x6c   : > { %p1330_p0 = por %p1329_p11, %p1328_p12 }
  0x6d   : > { %475 = vmatpush1.bf16.msra.mxu0 %v1237_v13  ;;  %1116 = vmatpush3.bf16.msra.mxu1 %v1252_v17  ;;  %p1324_p8 = pneg %p1323_p6 }
  0x6e   : > { %476 = vmatprep.subr.bf16.mxu0 %v1238_v15  ;;  %1117 = vmatprep.subr.bf16.mxu1 %v1253_v20 }
  0x6f   : > { %p1331_p5 = pnand %p1330_p0, %p1324_p8 }
  0x71   : > { %477 = vmatpush1.bf16.msra.mxu0 %v1240_v16  ;;  %1118 = vmatpush3.bf16.msra.mxu1 %v1253_v20 }
  0x72   : > { %478 = vmatprep.subr.bf16.mxu0 %v1241_v18  ;;  %1119 = vmatprep.subr.bf16.mxu1 %v1255_v23 }
  0x75   : > { %479 = vmatpush1.bf16.msra.mxu0 %v1243_v19  ;;  %1120 = vmatpush3.bf16.msra.mxu1 %v1255_v23 }
  0x76   : > { %480 = vmatprep.subr.bf16.mxu0 %v1244_v21  ;;  %1121 = vmatprep.subr.bf16.mxu1 %v1256_v24 }
  0x79   : > { %481 = vmatpush1.bf16.msra.mxu0 %v1246_v22  ;;  %1122 = vmatpush3.bf16.msra.mxu1 %v1256_v24 }
  0x7a   : > { %1123 = vmatprep.subr.bf16.mxu1 %v1258_v25 }
  0x7c   : > { %499 = vmatmul.mubr.bf16.vlgmr.msra.gmra.mrb[0].mxu0 %v1248_v11 }
  0x7d   : > { %508 = vmatprep.mubr.bf16.mxu0 %v1415_v0  ;;  %1124 = vmatpush3.bf16.msra.mxu1 %v1258_v25 }
  0x80   : > { %1126 = vmatmul.mubr.bf16.vlgmr.msra.gmra.mrb[0].mxu1 %v1251_v26 }
  0x81   : > { %1129 = vmatprep.mubr.bf16.mxu1 %v1254_v27 }
  0x84   : > { %509 = vmatmul.mubr.bf16.gmra.mrb[4].mxu0 %v1251_v26 }
  0x85   : > { %518 = vmatprep.mubr.bf16.mxu0 %v1415_v0 }
  0x88   : > { %1130 = vmatmul.mubr.bf16.gmra.mrb[4].mxu1 %v1257_v28 }
  0x89   : > { %1133 = vmatprep.mubr.bf16.mxu1 %v1259_v29 }
  0x8c   : > { %519 = vmatmul.mubr.bf16.gmra.mrb[8].mxu0 %v1254_v27 }
  0x8d   : > { %528 = vmatprep.mubr.bf16.mxu0 %v1415_v0 }
  0x90   : > { %1134 = vmatmul.mubr.bf16.gmra.mrb[8].mxu1 %v1260_v30 }
  0x91   : > { %1137 = vmatprep.mubr.bf16.mxu1 %v1261_v31 }
  0x94   : > { %529 = vmatmul.mubr.bf16.gmra.mrb[12].mxu0 %v1257_v28 }
  0x95   : > { %538 = vmatprep.mubr.bf16.mxu0 %v1415_v0 }
  0x98   : > { %1138 = vmatmul.mubr.bf16.gmra.mrb[12].mxu1 %v1262_v32 }
  0x9c   : > { %539 = vmatmul.mubr.bf16.gmra.mrb[16].mxu0 %v1259_v29 }
  0x9d   : > { %548 = vmatprep.mubr.bf16.mxu0 %v1415_v0 }
  0xa4   : > { %549 = vmatmul.mubr.bf16.gmra.mrb[20].mxu0 %v1260_v30 }
  0xa5   : > { %558 = vmatprep.mubr.bf16.mxu0 %v1415_v0 }
  0xac   : > { %559 = vmatmul.mubr.bf16.gmra.mrb[24].mxu0 %v1261_v31 }
  0xad   : > { %568 = vmatprep.mubr.bf16.mxu0 %v1415_v0 }
  0xb4   : > { %569 = vmatmul.mubr.bf16.gmra.mrb[28].mxu0 %v1262_v32 }
 0x14f   : > { %v500_v40 = vpop.f32.mrb[0].mxu0 }
 0x150   : > { %v501_v41 = vadd.f32 %v500_v40, %v1624_v38  ;;  %v502_v42 = vpop.f32.mrb[1].mxu0 }
 0x151   : > { %v503_v43 = vadd.f32 %v502_v42, %v1626_v39  ;;  %v504_v44 = vpop.f32.mrb[2].mxu0 }
 0x152   : > { %v505_v45 = vadd.f32 %v504_v44, %v1624_v38  ;;  %v506_v46 = vpop.f32.mrb[3].mxu0 }
 0x153   : > { %v1061_v47 = vpack.c.bf16 %v503_v43, %v501_v41  ;;  %v507_v48 = vadd.f32 %v506_v46, %v1626_v39  ;;  %v1127_v59 = vpop.f32.mrb[0].mxu1 }
 0x154   : > { %v622_v62 = vadd.f32 %v1127_v59, %v1637_v52  ;;  %v613_v63 = vpop.f32.mrb[1].mxu1 }
 0x155   : > { %836 = vst [vmem:[%s1633_s9] sm:$0xff] %v1061_v47  ;;  %v1063_v50 = vpack.c.bf16 %v507_v48, %v505_v45  ;;  %v614_v0 = vadd.f32 %v613_v63, %v1637_v52  ;;  %v1128_v1 = vpop.f32.mrb[2].mxu1 }
 0x156   : > { %v1066_v3 = vpack.c.bf16 %v622_v62, %v622_v62  ;;  %v625_v4 = vadd.f32 %v1128_v1, %v1637_v52  ;;  %v616_v5 = vpop.f32.mrb[3].mxu1 }
 0x157   : > { %838 = vst [vmem:[%s1633_s9 + $0xc] sm:$0xff] %v1063_v50  ;;  %v510_v51 = vpop.f32.mrb[4].mxu0  ;;  %v1062_v6 = vpack.c.bf16 %v614_v0, %v614_v0  ;;  %v617_v7 = vadd.f32 %v616_v5, %v1637_v52 }
 0x158   : > { %v511_v53 = vadd.f32 %v510_v51, %v1624_v38  ;;  %v512_v54 = vpop.f32.mrb[5].mxu0  ;;  %841 = vst [vmem:[%s1633_s9 + $0x20] sm:$0xf] %v1066_v3  ;;  %v1068_v9 = vpack.c.bf16 %v625_v4, %v625_v4 }
 0x159   : > { %v513_v55 = vadd.f32 %v512_v54, %v1626_v39  ;;  %v514_v56 = vpop.f32.mrb[6].mxu0  ;;  %837 = vst [vmem:[%s1633_s9 + $0x8] sm:$0xf] %v1062_v6  ;;  %v1064_v12 = vpack.c.bf16 %v617_v7, %v617_v7 }
 0x15a   : > { %v515_v57 = vadd.f32 %v514_v56, %v1624_v38  ;;  %v516_v58 = vpop.f32.mrb[7].mxu0  ;;  %843 = vst [vmem:[%s1633_s9 + $0x2c] sm:$0xf] %v1068_v9 }
 0x15b   : > { %v1065_v60 = vpack.c.bf16 %v513_v55, %v511_v53  ;;  %v517_v61 = vadd.f32 %v516_v58, %v1626_v39  ;;  %839 = vst [vmem:[%s1633_s9 + $0x14] sm:$0xf] %v1064_v12  ;;  %v1131_v17 = vpop.f32.mrb[4].mxu1 }
 0x15c   : > { %v638_v20 = vadd.f32 %v1131_v17, %v1637_v52  ;;  %v629_v21 = vpop.f32.mrb[5].mxu1 }
 0x15d   : > { %840 = vst [vmem:[%s1633_s9 + $0x18] sm:$0xff] %v1065_v60  ;;  %v1067_v2 = vpack.c.bf16 %v517_v61, %v515_v57  ;;  %v630_v22 = vadd.f32 %v629_v21, %v1637_v52  ;;  %v1132_v23 = vpop.f32.mrb[6].mxu1 }
 0x15e   : > { %v1074_v25 = vpack.c.bf16 %v638_v20, %v638_v20  ;;  %v641_v26 = vadd.f32 %v1132_v23, %v1637_v52  ;;  %v632_v27 = vpop.f32.mrb[7].mxu1 }
 0x15f   : > { %842 = vst [vmem:[%s1633_s9 + $0x24] sm:$0xff] %v1067_v2  ;;  %v520_v8 = vpop.f32.mrb[8].mxu0  ;;  %v1070_v28 = vpack.c.bf16 %v630_v22, %v630_v22  ;;  %v633_v29 = vadd.f32 %v632_v27, %v1637_v52 }
 0x160   : > { %v521_v10 = vadd.f32 %v520_v8, %v1624_v38  ;;  %v522_v11 = vpop.f32.mrb[9].mxu0  ;;  %849 = vst [vmem:[%s1633_s9 + $0x50] sm:$0xf] %v1074_v25  ;;  %v1076_v31 = vpack.c.bf16 %v641_v26, %v641_v26 }
 0x161   : > { %v523_v13 = vadd.f32 %v522_v11, %v1626_v39  ;;  %v524_v14 = vpop.f32.mrb[10].mxu0  ;;  %845 = vst [vmem:[%s1633_s9 + $0x38] sm:$0xf] %v1070_v28  ;;  %v1072_v34 = vpack.c.bf16 %v633_v29, %v633_v29 }
 0x162   : > { %v525_v15 = vadd.f32 %v524_v14, %v1624_v38  ;;  %v526_v16 = vpop.f32.mrb[11].mxu0  ;;  %851 = vst [vmem:[%s1633_s9 + $0x5c] sm:$0xf] %v1076_v31 }
 0x163   : > { %v1069_v18 = vpack.c.bf16 %v523_v13, %v521_v10  ;;  %v527_v19 = vadd.f32 %v526_v16, %v1626_v39  ;;  %847 = vst [vmem:[%s1633_s9 + $0x44] sm:$0xf] %v1072_v34  ;;  %v1135_v41 = vpop.f32.mrb[8].mxu1 }
 0x164   : > { %v654_v44 = vadd.f32 %v1135_v41, %v1637_v52  ;;  %v645_v45 = vpop.f32.mrb[9].mxu1 }
 0x165   : > { %844 = vst [vmem:[%s1633_s9 + $0x30] sm:$0xff] %v1069_v18  ;;  %v1071_v24 = vpack.c.bf16 %v527_v19, %v525_v15  ;;  %v646_v46 = vadd.f32 %v645_v45, %v1637_v52  ;;  %v1136_v47 = vpop.f32.mrb[10].mxu1 }
 0x166   : > { %v1082_v49 = vpack.c.bf16 %v654_v44, %v654_v44  ;;  %v657_v50 = vadd.f32 %v1136_v47, %v1637_v52  ;;  %v648_v51 = vpop.f32.mrb[11].mxu1 }
 0x167   : > { %846 = vst [vmem:[%s1633_s9 + $0x3c] sm:$0xff] %v1071_v24  ;;  %v530_v30 = vpop.f32.mrb[12].mxu0  ;;  %v1078_v53 = vpack.c.bf16 %v646_v46, %v646_v46  ;;  %v649_v54 = vadd.f32 %v648_v51, %v1637_v52 }
 0x168   : > { %v531_v32 = vadd.f32 %v530_v30, %v1624_v38  ;;  %v532_v33 = vpop.f32.mrb[13].mxu0  ;;  %857 = vst [vmem:[%s1633_s9 + $0x80] sm:$0xf] %v1082_v49  ;;  %v1084_v56 = vpack.c.bf16 %v657_v50, %v657_v50 }
 0x169   : > { %v533_v35 = vadd.f32 %v532_v33, %v1626_v39  ;;  %v534_v36 = vpop.f32.mrb[14].mxu0  ;;  %853 = vst [vmem:[%s1633_s9 + $0x68] sm:$0xf] %v1078_v53  ;;  %v1080_v59 = vpack.c.bf16 %v649_v54, %v649_v54 }
 0x16a   : > { %v535_v37 = vadd.f32 %v534_v36, %v1624_v38  ;;  %v536_v40 = vpop.f32.mrb[15].mxu0  ;;  %859 = vst [vmem:[%s1633_s9 + $0x8c] sm:$0xf] %v1084_v56 }
 0x16b   : > { %v1073_v42 = vpack.c.bf16 %v533_v35, %v531_v32  ;;  %v537_v43 = vadd.f32 %v536_v40, %v1626_v39  ;;  %855 = vst [vmem:[%s1633_s9 + $0x74] sm:$0xf] %v1080_v59  ;;  %v1139_v0 = vpop.f32.mrb[12].mxu1 }
 0x16c   : > { %v670_v3 = vadd.f32 %v1139_v0, %v1637_v52  ;;  %v661_v4 = vpop.f32.mrb[13].mxu1 }
 0x16d   : > { %848 = vst [vmem:[%s1633_s9 + $0x48] sm:$0xff] %v1073_v42  ;;  %v1075_v48 = vpack.c.bf16 %v537_v43, %v535_v37  ;;  %v662_v5 = vadd.f32 %v661_v4, %v1637_v52  ;;  %v1140_v6 = vpop.f32.mrb[14].mxu1 }
 0x16e   : > { %v1090_v8 = vpack.c.bf16 %v670_v3, %v670_v3  ;;  %v673_v9 = vadd.f32 %v1140_v6, %v1637_v52  ;;  %v664_v10 = vpop.f32.mrb[15].mxu1 }
 0x16f   : > { %850 = vst [vmem:[%s1633_s9 + $0x54] sm:$0xff] %v1075_v48  ;;  %v540_v55 = vpop.f32.mrb[16].mxu0  ;;  %v1086_v11 = vpack.c.bf16 %v662_v5, %v662_v5  ;;  %v665_v12 = vadd.f32 %v664_v10, %v1637_v52 }
 0x170   : > { %v541_v57 = vadd.f32 %v540_v55, %v1624_v38  ;;  %v542_v58 = vpop.f32.mrb[17].mxu0  ;;  %865 = vst [vmem:[%s1633_s9 + $0xb0] sm:$0xf] %v1090_v8  ;;  %v1092_v14 = vpack.c.bf16 %v673_v9, %v673_v9 }
 0x171   : > { %v543_v60 = vadd.f32 %v542_v58, %v1626_v39  ;;  %v544_v61 = vpop.f32.mrb[18].mxu0  ;;  %861 = vst [vmem:[%s1633_s9 + $0x98] sm:$0xf] %v1086_v11  ;;  %v1088_v17 = vpack.c.bf16 %v665_v12, %v665_v12 }
 0x172   : > { %v545_v62 = vadd.f32 %v544_v61, %v1624_v38  ;;  %v546_v63 = vpop.f32.mrb[19].mxu0  ;;  %867 = vst [vmem:[%s1633_s9 + $0xbc] sm:$0xf] %v1092_v14 }
 0x173   : > { %v1077_v1 = vpack.c.bf16 %v543_v60, %v541_v57  ;;  %v547_v2 = vadd.f32 %v546_v63, %v1626_v39  ;;  %863 = vst [vmem:[%s1633_s9 + $0xa4] sm:$0xf] %v1088_v17 }
 0x175   : > { %852 = vst [vmem:[%s1633_s9 + $0x60] sm:$0xff] %v1077_v1  ;;  %v1079_v7 = vpack.c.bf16 %v547_v2, %v545_v62 }
 0x177   : > { %854 = vst [vmem:[%s1633_s9 + $0x6c] sm:$0xff] %v1079_v7  ;;  %v550_v13 = vpop.f32.mrb[20].mxu0 }
 0x178   : > { %v551_v15 = vadd.f32 %v550_v13, %v1624_v38  ;;  %v552_v16 = vpop.f32.mrb[21].mxu0 }
 0x179   : > { %v553_v18 = vadd.f32 %v552_v16, %v1626_v39  ;;  %v554_v19 = vpop.f32.mrb[22].mxu0 }
 0x17a   : > { %v555_v20 = vadd.f32 %v554_v19, %v1624_v38  ;;  %v556_v21 = vpop.f32.mrb[23].mxu0 }
 0x17b   : > { %v1081_v52 = vpack.c.bf16 %v553_v18, %v551_v15  ;;  %v557_v22 = vadd.f32 %v556_v21, %v1626_v39 }
 0x17d   : > { %856 = vst [vmem:[%s1633_s9 + $0x78] sm:$0xff] %v1081_v52  ;;  %v1083_v23 = vpack.c.bf16 %v557_v22, %v555_v20 }
 0x17f   : > { %858 = vst [vmem:[%s1633_s9 + $0x84] sm:$0xff] %v1083_v23  ;;  %v560_v24 = vpop.f32.mrb[24].mxu0 }
 0x180   : > { %v561_v25 = vadd.f32 %v560_v24, %v1624_v38  ;;  %v562_v26 = vpop.f32.mrb[25].mxu0 }
 0x181   : > { %v563_v27 = vadd.f32 %v562_v26, %v1626_v39  ;;  %v564_v28 = vpop.f32.mrb[26].mxu0 }
 0x182   : > { %v565_v29 = vadd.f32 %v564_v28, %v1624_v38  ;;  %v566_v30 = vpop.f32.mrb[27].mxu0 }
 0x183   : > { %v1085_v31 = vpack.c.bf16 %v563_v27, %v561_v25  ;;  %v567_v32 = vadd.f32 %v566_v30, %v1626_v39 }
 0x185   : > { %860 = vst [vmem:[%s1633_s9 + $0x90] sm:$0xff] %v1085_v31  ;;  %v1087_v33 = vpack.c.bf16 %v567_v32, %v565_v29 }
 0x187   : > { %862 = vst [vmem:[%s1633_s9 + $0x9c] sm:$0xff] %v1087_v33  ;;  %v570_v34 = vpop.f32.mrb[28].mxu0 }
 0x188   : > { %v571_v35 = vadd.f32 %v570_v34, %v1624_v38  ;;  %v572_v36 = vpop.f32.mrb[29].mxu0 }
 0x189   : > { %v573_v37 = vadd.f32 %v572_v36, %v1626_v39  ;;  %v574_v40 = vpop.f32.mrb[30].mxu0 }
 0x18a   : > { %v575_v41 = vadd.f32 %v574_v40, %v1624_v38  ;;  %v576_v42 = vpop.f32.mrb[31].mxu0 }
 0x18b   : > { %v1089_v43 = vpack.c.bf16 %v573_v37, %v571_v35  ;;  %v577_v44 = vadd.f32 %v576_v42, %v1626_v39 }
 0x18d   : > { %864 = vst [vmem:[%s1633_s9 + $0xa8] sm:$0xff] %v1089_v43  ;;  %v1091_v45 = vpack.c.bf16 %v577_v44, %v575_v41 }
 0x18f   : > { %866 = vst [vmem:[%s1633_s9 + $0xb4] sm:$0xff] %v1091_v45 }
 0x190   : > { %1334 = shalt.err (!%p1331_p5)
}
 0x191   : > { %s1335_s29 = scalar_lea.hbm %s1716_s7, 3072  ;;  %s1339_s20 = scalar_lea.hbm %s1772_s3, 6144 }
 0x192   : > { %p1336_p9 = scmp.ne.s32.totalorder %s1716_s7, %s1335_s29  ;;  %p1340_p3 = scmp.lt.u32.totalorder %s1716_s7, %s1772_s3 }
 0x193   : > { %p1341_p7 = scmp.lt.u32.totalorder %s1339_s20, %s1335_s29  ;;  %p1343_p4 = scmp.lt.u32.totalorder %s1335_s29, %s1716_s7 }
 0x194   : > { %p1337_p1 = pnand %p1336_p9, %p1535_p10 }
 0x195   : > { %p1342_p13 = por %p1341_p7, %p1340_p3 }
 0x196   : > { %p1338_p2 = pneg %p1337_p1 }
 0x197   : > { %p1344_p6 = por %p1343_p4, %p1342_p13 }
 0x199   : > { %p1345_p8 = pnand %p1344_p6, %p1338_p2 }
 0x19b   : > { %1348 = shalt.err (!%p1345_p8)
}
 0x19c   : > { %s1417_s9 = smov 192   ;;  %s1418_s10 = smov 12  }
 0x19d   : > { %1149 = dma.vmem_to_hbm [thread:$0]  (%p1535_p10), %s1718_s11, 3072, %s1716_s7, %s869_s15, %s1417_s9, %s1417_s9, %s1418_s10  }
 0x19e PF: > { %s900_s18 = sand.u32 1, %s1387_s12   ;;  %p1790_p12 = scmp.ne.s32.totalorder %s1780_s23, 0 }
 0x19f   : > { %p1791_p11 = scmp.ge.s32.totalorder %s1407_s17, 2  ;;  %s901_s26 = scalar_lea.sflag [#allocation4], %s900_s18 }
 0x1a1   : > { %p1160_p0 = pnand %p1791_p11, %p1790_p12 }
 0x1a3   : > { %1382 = dma.done.wait (!%p1160_p0), %s901_s26, 3072  }
 0x1a4   : > { %1384 = vsyncadd (!%p1160_p0), %s901_s26, 4294964224  ;;  %s20_s17 = sadd.s32 1, %s1407_s17   ;;  %s1792_s12 = smov %s1391_s13 }
 0x1a5   : > { %p17_p5 = scmp.ge.s32.totalorder %s20_s17, 4   ;;  %s1793_s13 = smov %s1395_s14 }
 0x1a6   : > { %s1794_s14 = smov %s1544_s5  ;;  %s1795_s15 = smov %s1403_s16 }
 0x1a7   : > { %s1796_s16 = smov %s1798_s28  ;;  %19 = sbr.rel (!%p17_p5) target bundleno = 7 (0x7), region = 81 }
 0x1ae   :  { %906 = vsyncpa [#allocation3], 1 }
 0x1af   :  { %908 = vsyncpa [#allocation3 + $0x1], 1 }
 0x1b0   :  { %909 = vsyncpa [#allocation6], 1 }
 0x1b1   :  { %910 = vsyncpa [#allocation4], 1 }
 0x1b2   :  { %912 = vsyncpa [#allocation4 + $0x1], 1 }

</bundles_post_ra>
